<compile_context>
chip_gen: v5e
topology: v5e:2x2
jax: 0.10.0
libtpu: 0.0.40
codegen_flags: <defaults>
</compile_context>

<pallas_src>
from functools import partial

import jax
import jax.numpy as jnp
from jax.experimental import pallas as pl
from jax.experimental.pallas import tpu as pltpu


# -----------------------------------------------------------------------------
# Kernel
# -----------------------------------------------------------------------------
def gaussian_mlp_kernel(x_ref, w1_ref, b1_ref, w2_ref, b2_ref, w3_ref, b3_ref,
                        mean_ref, var_ref, *, bf16_epilogue):
    # bf16 elementwise epilogue on v6e/v7x (bf16 VALU/EUP); f32 on v5e.
    ew_dtype = jnp.bfloat16 if bf16_epilogue else jnp.float32

    x = x_ref[...]                                             # [TB, 24] bf16

    # layer 1 (fused mean|var): bf16 x bf16 -> f32 accumulate on MXU
    a1 = jnp.dot(x, w1_ref[...], preferred_element_type=jnp.float32) + b1_ref[...]
    # dropout(p=0.1) -> identity in eval mode
    h1 = jnp.tanh(a1.astype(ew_dtype)).astype(jnp.bfloat16)    # [TB, 64]

    a2 = jnp.dot(h1, w2_ref[...], preferred_element_type=jnp.float32) + b2_ref[...]
    # dropout(p=0.1) -> identity in eval mode
    h2 = jnp.tanh(a2.astype(ew_dtype)).astype(jnp.bfloat16)    # [TB, 64]

    y = jnp.dot(h2, w3_ref[...], preferred_element_type=jnp.float32) + b3_ref[...]
    # y: [TB, 48] = [mean | var_pre]

    half = mean_ref.shape[1]
    mean_ref[...] = y[:, :half]

    v = y[:, half:]
    # torch.nn.Softplus(beta=1, threshold=20): x if x > 20 else log1p(exp(x));
    # clamp the exp argument so the untaken branch never produces inf.
    var_ref[...] = jnp.where(v > 20.0, v, jnp.log1p(jnp.exp(jnp.minimum(v, 20.0))))


# -----------------------------------------------------------------------------
# Parameter construction / packing
# -----------------------------------------------------------------------------
def make_params(key, n_inputs=24, n_hidden=32, n_outputs=24):
    """Deterministic init mimicking nn.Linear default U(-1/sqrt(fan_in), 1/sqrt(fan_in)).

    Weights are stored as [in_features, out_features] (transpose of torch layout)
    so the kernel computes x @ W + b."""
    dims = [(n_inputs, n_hidden), (n_hidden, n_hidden), (n_hidden, n_outputs)]
    params = []
    for _branch in range(2):  # mean branch, var branch
        for (fan_in, fan_out) in dims:
            key, kw, kb = jax.random.split(key, 3)
            bound = 1.0 / jnp.sqrt(jnp.float32(fan_in))
            w = jax.random.uniform(kw, (fan_in, fan_out), jnp.float32,
                                   minval=-bound, maxval=bound)
            b = jax.random.uniform(kb, (1, fan_out), jnp.float32,
                                   minval=-bound, maxval=bound)
            params.append(w)
            params.append(b)
    return params  # [mw1, mb1, mw2, mb2, mw3, mb3, vw1, vb1, vw2, vb2, vw3, vb3]


def pack_params(params):
    """Fuse mean/var branch weights into one packed (bf16) weight set."""
    (mw1, mb1, mw2, mb2, mw3, mb3,
     vw1, vb1, vw2, vb2, vw3, vb3) = params

    def block_diag(a, b):
        za = jnp.zeros((a.shape[0], b.shape[1]), a.dtype)
        zb = jnp.zeros((b.shape[0], a.shape[1]), b.dtype)
        return jnp.concatenate(
            [jnp.concatenate([a, za], axis=1),
             jnp.concatenate([zb, b], axis=1)], axis=0)

    w1 = jnp.concatenate([mw1, vw1], axis=1)          # [24, 64]
    b1 = jnp.concatenate([mb1, vb1], axis=1)          # [1, 64]
    w2 = block_diag(mw2, vw2)                         # [64, 64]
    b2 = jnp.concatenate([mb2, vb2], axis=1)          # [1, 64]
    w3 = block_diag(mw3, vw3)                         # [64, 48]
    b3 = jnp.concatenate([mb3, vb3], axis=1)          # [1, 48]

    # bf16 weights for native-rate MXU matmuls; keep biases f32.
    return (w1.astype(jnp.bfloat16), b1.astype(jnp.float32),
            w2.astype(jnp.bfloat16), b2.astype(jnp.float32),
            w3.astype(jnp.bfloat16), b3.astype(jnp.float32))


# -----------------------------------------------------------------------------
# Wrapper
# -----------------------------------------------------------------------------
def _round_up(n, m):
    return pl.cdiv(n, m) * m


def _default_bf16_epilogue():
    """bf16 VALU/EUP exist on v6e/v7x; v5 generations lack them."""
    try:
        kind = jax.devices()[0].device_kind.lower()
    except Exception:
        return True
    return "v5" not in kind


def gaussian_mlp_forward(X, packed_params, tb=4096, bf16_epilogue=None):
    """X: [B, F1, F2] with F1*F2 == n_inputs (24).

    Returns (Mean, Var), each [B, n_outputs//2, 2]."""
    if bf16_epilogue is None:
        bf16_epilogue = _default_bf16_epilogue()

    B = X.shape[0]
    x2d = X.reshape(B, X.shape[1] * X.shape[2]).astype(jnp.bfloat16)
    n_in = x2d.shape[1]

    w1, b1, w2, b2, w3, b3 = packed_params
    assert w1.shape[0] == n_in, (w1.shape, n_in)
    out_w = w3.shape[1]            # 2 * n_outputs (48)
    n_out = out_w // 2             # per-branch output width (24)

    # Batch tile: multiple of 8 sublanes, large (per-grid-step overhead ~0.35us
    # is significant for this tiny MLP), but capped so the grid has >= 2 steps
    # when the batch allows -> megacore sharding on v7x's two TensorCores.
    # Even at TB=4096 the double-buffered blocks are a few MiB, far below the
    # scoped VMEM default on every generation.
    Bmin = int(_round_up(B, 8))
    TB = int(min(tb, Bmin))
    if Bmin >= 16 and TB >= Bmin:
        TB = int(_round_up(pl.cdiv(Bmin, 2), 8))
    Bp = int(_round_up(B, TB))
    if Bp != B:
        x2d = jnp.pad(x2d, ((0, Bp - B), (0, 0)))

    x_spec = pl.BlockSpec((TB, n_in), lambda i: (i, 0))
    mean_spec = pl.BlockSpec((TB, n_out), lambda i: (i, 0))
    var_spec = pl.BlockSpec((TB, n_out), lambda i: (i, 0))

    def const_spec(arr):
        # Full array, same block every grid step -> stays resident in VMEM.
        return pl.BlockSpec(arr.shape, lambda i: (0, 0))

    mean_out, var_out = pl.pallas_call(
        partial(gaussian_mlp_kernel, bf16_epilogue=bf16_epilogue),
        out_shape=(jax.ShapeDtypeStruct((Bp, n_out), jnp.float32),
                   jax.ShapeDtypeStruct((Bp, n_out), jnp.float32)),
        grid=(Bp // TB,),
        in_specs=[x_spec,
                  const_spec(w1), const_spec(b1),
                  const_spec(w2), const_spec(b2),
                  const_spec(w3), const_spec(b3)],
        out_specs=[mean_spec, var_spec],
        compiler_params=pltpu.CompilerParams(
            dimension_semantics=("parallel",)),
    )(x2d, w1, b1, w2, b2, w3, b3)

    Mean = mean_out[:B].reshape(B, n_out // 2, 2)
    Var = var_out[:B].reshape(B, n_out // 2, 2)
    return Mean, Var


# -----------------------------------------------------------------------------
# Pure-JAX reference (full f32, unfused) for sanity checking
# -----------------------------------------------------------------------------
def _reference(X, params, n_outputs=24):
    B = X.shape[0]
    x = X.reshape(B, -1).astype(jnp.float32)
    (mw1, mb1, mw2, mb2, mw3, mb3,
     vw1, vb1, vw2, vb2, vw3, vb3) = params

    def branch(x, w1, b1, w2, b2, w3, b3):
        h = jnp.tanh(x @ w1 + b1)
        h = jnp.tanh(h @ w2 + b2)
        return h @ w3 + b3

    mean = branch(x, mw1, mb1, mw2, mb2, mw3, mb3)
    var = jax.nn.softplus(branch(x, vw1, vb1, vw2, vb2, vw3, vb3))
    return (mean.reshape(B, n_outputs // 2, 2),
            var.reshape(B, n_outputs // 2, 2))


if __name__ == "__main__":
    key = jax.random.PRNGKey(0)
    key, kx, kp = jax.random.split(key, 3)

    # X: [B, 12, 2] -> flattened feature dim 24 (n_inputs=1 -> 1*24)
    B = 8
    X = jax.random.normal(kx, (B, 12, 2), jnp.float32)
    raw_params = make_params(kp)
    packed = pack_params(raw_params)

    Mean, Var = gaussian_mlp_forward(X, packed)
    jax.block_until_ready((Mean, Var))

    Mean_ref, Var_ref = _reference(X, raw_params)
    assert Mean.shape == (B, 12, 2) and Var.shape == (B, 12, 2)
    # bf16 matmul / epilogue path -> loosened tolerance vs f32 reference
    assert jnp.allclose(Mean, Mean_ref, atol=5e-2, rtol=5e-2)
    assert jnp.allclose(Var, Var_ref, atol=5e-2, rtol=5e-2)
    assert bool(jnp.all(Var >= 0.0))

    # Check 2: non-multiple-of-tile batch, multi-step grid (padding path)
    key, kx2 = jax.random.split(key)
    B2 = 20
    X2 = jax.random.normal(kx2, (B2, 12, 2), jnp.float32)
    Mean2, Var2 = gaussian_mlp_forward(X2, packed, tb=8)    # grid = (3,), padded to 24
    jax.block_until_ready((Mean2, Var2))
    Mean2_ref, Var2_ref = _reference(X2, raw_params)
    assert Mean2.shape == (B2, 12, 2) and Var2.shape == (B2, 12, 2)
    assert jnp.allclose(Mean2, Mean2_ref, atol=5e-2, rtol=5e-2)
    assert jnp.allclose(Var2, Var2_ref, atol=5e-2, rtol=5e-2)
    assert bool(jnp.all(Var2 >= 0.0))

    # Check 3: default tile policy splits a single-step batch into 2 grid steps
    key, kx3 = jax.random.split(key)
    B3 = 48
    X3 = jax.random.normal(kx3, (B3, 12, 2), jnp.float32)
    Mean3, Var3 = gaussian_mlp_forward(X3, packed)          # TB=24, grid=(2,)
    jax.block_until_ready((Mean3, Var3))
    Mean3_ref, Var3_ref = _reference(X3, raw_params)
    assert jnp.allclose(Mean3, Mean3_ref, atol=5e-2, rtol=5e-2)
    assert jnp.allclose(Var3, Var3_ref, atol=5e-2, rtol=5e-2)
    assert bool(jnp.all(Var3 >= 0.0))

    print("KERNEL_OK")
</pallas_src>

<mosaic_0001>
module attributes {stable_mosaic.version = 11 : i64} {
  func.func @gaussian_mlp_kernel(%arg0: i32, %arg1: memref<8x24xbf16, #tpu.memory_space<vmem>>, %arg2: memref<24x64xbf16, #tpu.memory_space<vmem>>, %arg3: memref<1x64xf32, #tpu.memory_space<vmem>>, %arg4: memref<64x64xbf16, #tpu.memory_space<vmem>>, %arg5: memref<1x64xf32, #tpu.memory_space<vmem>>, %arg6: memref<64x48xbf16, #tpu.memory_space<vmem>>, %arg7: memref<1x48xf32, #tpu.memory_space<vmem>>, %arg8: memref<8x24xf32, #tpu.memory_space<vmem>>, %arg9: memref<8x24xf32, #tpu.memory_space<vmem>>) attributes {dimension_semantics = [#tpu.dimension_semantics<parallel>], iteration_bounds = array<i64: 1>, scalar_prefetch = 0 : i64, scratch_operands = 0 : i64, tpu.core_type = #tpu.core_type<tc>, window_params = [{transform_indices = @transform_0, window_bounds = array<i64: 8, 24>}, {pipeline_mode = #tpu.pipeline_mode<synchronous>, transform_indices = @transform_1, window_bounds = array<i64: 24, 64>}, {pipeline_mode = #tpu.pipeline_mode<synchronous>, transform_indices = @transform_2, window_bounds = array<i64: 1, 64>}, {pipeline_mode = #tpu.pipeline_mode<synchronous>, transform_indices = @transform_3, window_bounds = array<i64: 64, 64>}, {pipeline_mode = #tpu.pipeline_mode<synchronous>, transform_indices = @transform_4, window_bounds = array<i64: 1, 64>}, {pipeline_mode = #tpu.pipeline_mode<synchronous>, transform_indices = @transform_5, window_bounds = array<i64: 64, 48>}, {pipeline_mode = #tpu.pipeline_mode<synchronous>, transform_indices = @transform_6, window_bounds = array<i64: 1, 48>}, {transform_indices = @transform_7, window_bounds = array<i64: 8, 24>}, {transform_indices = @transform_8, window_bounds = array<i64: 8, 24>}]} {
    %c0 = arith.constant 0 : index
    %c0_0 = arith.constant 0 : index
    %0 = vector.load %arg1[%c0, %c0_0] : memref<8x24xbf16, #tpu.memory_space<vmem>>, vector<8x24xbf16>
    %c0_1 = arith.constant 0 : index
    %c0_2 = arith.constant 0 : index
    %1 = vector.load %arg2[%c0_1, %c0_2] : memref<24x64xbf16, #tpu.memory_space<vmem>>, vector<24x64xbf16>
    %cst = arith.constant dense<0.000000e+00> : vector<8x64xf32>
    %2 = tpu.matmul %0, %1, %cst {dimension_numbers = #tpu.dot_dimension_numbers<[1], [0], [0], [1], [0, 0, 1, 1], [], []>} : vector<8x24xbf16>, vector<24x64xbf16>, vector<8x64xf32> -> vector<8x64xf32>
    %c0_3 = arith.constant 0 : index
    %c0_4 = arith.constant 0 : index
    %3 = vector.load %arg3[%c0_3, %c0_4] : memref<1x64xf32, #tpu.memory_space<vmem>>, vector<1x64xf32>
    %4 = vector.broadcast %3 : vector<1x64xf32> to vector<8x64xf32>
    %5 = arith.addf %2, %4 : vector<8x64xf32>
    %6 = arith.truncf %5 : vector<8x64xf32> to vector<8x64xbf16>
    %7 = math.tanh %6 : vector<8x64xbf16>
    %c0_5 = arith.constant 0 : index
    %c0_6 = arith.constant 0 : index
    %8 = vector.load %arg4[%c0_5, %c0_6] : memref<64x64xbf16, #tpu.memory_space<vmem>>, vector<64x64xbf16>
    %cst_7 = arith.constant dense<0.000000e+00> : vector<8x64xf32>
    %9 = tpu.matmul %7, %8, %cst_7 {dimension_numbers = #tpu.dot_dimension_numbers<[1], [0], [0], [1], [0, 0, 1, 1], [], []>} : vector<8x64xbf16>, vector<64x64xbf16>, vector<8x64xf32> -> vector<8x64xf32>
    %c0_8 = arith.constant 0 : index
    %c0_9 = arith.constant 0 : index
    %10 = vector.load %arg5[%c0_8, %c0_9] : memref<1x64xf32, #tpu.memory_space<vmem>>, vector<1x64xf32>
    %11 = vector.broadcast %10 : vector<1x64xf32> to vector<8x64xf32>
    %12 = arith.addf %9, %11 : vector<8x64xf32>
    %13 = arith.truncf %12 : vector<8x64xf32> to vector<8x64xbf16>
    %14 = math.tanh %13 : vector<8x64xbf16>
    %c0_10 = arith.constant 0 : index
    %c0_11 = arith.constant 0 : index
    %15 = vector.load %arg6[%c0_10, %c0_11] : memref<64x48xbf16, #tpu.memory_space<vmem>>, vector<64x48xbf16>
    %cst_12 = arith.constant dense<0.000000e+00> : vector<8x48xf32>
    %16 = tpu.matmul %14, %15, %cst_12 {dimension_numbers = #tpu.dot_dimension_numbers<[1], [0], [0], [1], [0, 0, 1, 1], [], []>} : vector<8x64xbf16>, vector<64x48xbf16>, vector<8x48xf32> -> vector<8x48xf32>
    %c0_13 = arith.constant 0 : index
    %c0_14 = arith.constant 0 : index
    %17 = vector.load %arg7[%c0_13, %c0_14] : memref<1x48xf32, #tpu.memory_space<vmem>>, vector<1x48xf32>
    %18 = vector.broadcast %17 : vector<1x48xf32> to vector<8x48xf32>
    %19 = arith.addf %16, %18 : vector<8x48xf32>
    %20 = vector.extract_strided_slice %19 {offsets = [0, 0], sizes = [8, 24], strides = [1, 1]} : vector<8x48xf32> to vector<8x24xf32>
    %c0_15 = arith.constant 0 : index
    %c0_16 = arith.constant 0 : index
    %21 = vector.load %arg8[%c0_15, %c0_16] : memref<8x24xf32, #tpu.memory_space<vmem>>, vector<8x24xf32>
    tpu.vector_store %arg8[%c0_15, %c0_16], %20 {strides = array<i32>} : memref<8x24xf32, #tpu.memory_space<vmem>>, vector<8x24xf32>,
    %22 = vector.extract_strided_slice %19 {offsets = [0, 24], sizes = [8, 24], strides = [1, 1]} : vector<8x48xf32> to vector<8x24xf32>
    %cst_17 = arith.constant 2.000000e+01 : f32
    %23 = vector.broadcast %cst_17 : f32 to vector<8x24xf32>
    %24 = arith.cmpf ogt, %22, %23 : vector<8x24xf32>
    %cst_18 = arith.constant 2.000000e+01 : f32
    %25 = vector.broadcast %cst_18 : f32 to vector<8x24xf32>
    %26 = arith.minimumf %22, %25 : vector<8x24xf32>
    %27 = math.exp %26 : vector<8x24xf32>
    %28 = math.log1p %27 : vector<8x24xf32>
    %29 = arith.select %24, %22, %28 : vector<8x24xi1>, vector<8x24xf32>
    %c0_19 = arith.constant 0 : index
    %c0_20 = arith.constant 0 : index
    %30 = vector.load %arg9[%c0_19, %c0_20] : memref<8x24xf32, #tpu.memory_space<vmem>>, vector<8x24xf32>
    tpu.vector_store %arg9[%c0_19, %c0_20], %29 {strides = array<i32>} : memref<8x24xf32, #tpu.memory_space<vmem>>, vector<8x24xf32>,
    return
  }
  func.func @transform_0(%arg0: i32) -> (i32, i32) {
    %c0_i32 = arith.constant 0 : i32
    %c0_i32_0 = arith.constant 0 : i32
    return %arg0, %c0_i32 : i32, i32
  }
  func.func @transform_1(%arg0: i32) -> (i32, i32) {
    %c0_i32 = arith.constant 0 : i32
    %c0_i32_0 = arith.constant 0 : i32
    %c0_i32_1 = arith.constant 0 : i32
    return %c0_i32, %c0_i32_0 : i32, i32
  }
  func.func @transform_2(%arg0: i32) -> (i32, i32) {
    %c0_i32 = arith.constant 0 : i32
    %c0_i32_0 = arith.constant 0 : i32
    %c0_i32_1 = arith.constant 0 : i32
    return %c0_i32, %c0_i32_0 : i32, i32
  }
  func.func @transform_3(%arg0: i32) -> (i32, i32) {
    %c0_i32 = arith.constant 0 : i32
    %c0_i32_0 = arith.constant 0 : i32
    %c0_i32_1 = arith.constant 0 : i32
    return %c0_i32, %c0_i32_0 : i32, i32
  }
  func.func @transform_4(%arg0: i32) -> (i32, i32) {
    %c0_i32 = arith.constant 0 : i32
    %c0_i32_0 = arith.constant 0 : i32
    %c0_i32_1 = arith.constant 0 : i32
    return %c0_i32, %c0_i32_0 : i32, i32
  }
  func.func @transform_5(%arg0: i32) -> (i32, i32) {
    %c0_i32 = arith.constant 0 : i32
    %c0_i32_0 = arith.constant 0 : i32
    %c0_i32_1 = arith.constant 0 : i32
    return %c0_i32, %c0_i32_0 : i32, i32
  }
  func.func @transform_6(%arg0: i32) -> (i32, i32) {
    %c0_i32 = arith.constant 0 : i32
    %c0_i32_0 = arith.constant 0 : i32
    %c0_i32_1 = arith.constant 0 : i32
    return %c0_i32, %c0_i32_0 : i32, i32
  }
  func.func @transform_7(%arg0: i32) -> (i32, i32) {
    %c0_i32 = arith.constant 0 : i32
    %c0_i32_0 = arith.constant 0 : i32
    return %arg0, %c0_i32 : i32, i32
  }
  func.func @transform_8(%arg0: i32) -> (i32, i32) {
    %c0_i32 = arith.constant 0 : i32
    %c0_i32_0 = arith.constant 0 : i32
    return %arg0, %c0_i32 : i32, i32
  }
}

</mosaic_0001>

<bundles_post_ra>
// kernel: tpu_custom_call.1
= control target key start
LH: loop header
LB: loop body
LE: loop exit
PB: predicated region body
PF: predicated region fallthrough
CT: control target
= control target key end

     0   :  { %14 = vsyncpa [#allocation3], 0  ;;  %vm52_vm0 = vcmask 1043456   ;;  %s449_s0 = inlined_call_operand.vmem [shape: bf16[8,24], index: 0, kind: input, shape index: {}]   ;;  %s450_s1 = inlined_call_operand.vmem [shape: bf16[24,64], index: 1, kind: input, shape index: {}]   ;;  %s451_s2 = inlined_call_operand.vmem [shape: f32[1,64], index: 2, kind: input, shape index: {}]   ;;  %s452_s3 = inlined_call_operand.vmem [shape: bf16[64,64], index: 3, kind: input, shape index: {}]   ;;  %s453_s4 = inlined_call_operand.vmem [shape: f32[1,64], index: 4, kind: input, shape index: {}]   ;;  %s454_s5 = inlined_call_operand.vmem [shape: bf16[64,48], index: 5, kind: input, shape index: {}]   ;;  %s455_s6 = inlined_call_operand.vmem [shape: f32[1,48], index: 6, kind: input, shape index: {}]   ;;  %s456_s7 = inlined_call_operand.hbm [shape: f32[8,24], index: 7, kind: output, shape index: {0}]   ;;  %s457_s8 = inlined_call_operand.hbm [shape: f32[8,24], index: 8, kind: output, shape index: {1}]  }
   0x1   :  { %v34_v0 = vld [vmem:[%s450_s1 + $0x8] sm:$0xf] }
   0x2   :  { %v44_v1 = vunpack.c.l.b16 %v34_v0 }
   0x3   :  { %15 = vsyncpa [#allocation5], 0  ;;  %v273_v4 = vld [vmem:[%s450_s1] sm:$0xff]  ;;  %vm48_vm1 = vcmask 195584   ;;  %v277_v6 = vld [vmem:[%s452_s3 + $0x18] sm:$0xff]  ;;  %vm109_vm2 = vcmask 523264  }
   0x4   :  { %v46_v2 = vpack.c.b16 %v44_v1, %v44_v1  ;;  %v31_v5 = vld [vmem:[%s449_s0] sm:$0xf]  ;;  %117 = vmatpush.bf16.msra.mxu1 %v277_v6  ;;  %v276_v7 = vld [vmem:[%s452_s3 + $0x10] sm:$0xff]  ;;  %v275_v8 = vld [vmem:[%s452_s3 + $0x8] sm:$0xff]  ;;  %s209_s9 = sshll.u32 %s456_s7, 4  ;;  %s350_s10 = smov [#allocation4]   ;;  %s210_s9 = int_to_ptr.hbm [resolvable:$true] %s209_s9 }
   0x5   :  { %v274_v9 = vld [vmem:[%s452_s3] sm:$0xff]  ;;  %v281_v18 = vld [vmem:[%s454_s5 + $0x18] sm:$0xff]  ;;  %v280_v19 = vld [vmem:[%s454_s5 + $0x10] sm:$0xff]  ;;  %s218_s11 = sshll.u32 %s350_s10, 4  ;;  %s220_s13 = sshll.u32 %s457_s8, 4  ;;  %s219_s11 = int_to_ptr.vmem [resolvable:$true] %s218_s11  ;;  %s221_s13 = int_to_ptr.hbm [resolvable:$true] %s220_s13 }
   0x6   :  { %v54_v3 = vsel %vm52_vm0, %v46_v2, 0  ;;  %v285_v10 = vld [vmem:[%s451_s2] ss:$0 sm:$0xff]  ;;  %173 = vmatpush.bf16.msra.mxu2 %v281_v18  ;;  %v279_v20 = vld [vmem:[%s454_s5 + $0x8] sm:$0xff] }
   0x7   :  { %62 = vmatpush.bf16.msra.mxu0 %v54_v3  ;;  %v278_v21 = vld [vmem:[%s454_s5] sm:$0xff] }
   0x8   :  { %118 = vmatpush.bf16.msra.mxu1 %v276_v7  ;;  %v286_v22 = vld [vmem:[%s453_s4] ss:$0 sm:$0xff]  ;;  %s348_s4 = smov [#allocation2]  }
   0x9   :  { %v287_v30 = vld [vmem:[%s455_s6] ss:$0 sm:$0xff]  ;;  %s207_s5 = sshll.u32 %s348_s4, 4  ;;  %s349_s6 = smov 104   ;;  %s208_s5 = int_to_ptr.vmem [resolvable:$true] %s207_s5 }
   0xa   :  { %174 = vmatpush.bf16.msra.mxu2 %v280_v19 }
   0xb   :  { %63 = vmatpush.bf16.msra.mxu0 %v273_v4 }
   0xc   :  { %119 = vmatpush.bf16.msra.mxu1 %v275_v8 }
   0xe   :  { %238 = vmatmul.msk.bf16.vlgmr.msra.gmra.mxu0 %vm48_vm1, %v31_v5  ;;  %175 = vmatpush.bf16.msra.mxu2 %v279_v20 }
  0x10   :  { %120 = vmatpush.bf16.msra.mxu1 %v274_v9 }
  0x12   :  { %176 = vmatpush.bf16.msra.mxu2 %v278_v21 }
  0x8b   :  { %v65_v11 = vpop.f32.mrf.mxu0 }
  0x8c   :  { %v66_v12 = vadd.f32 %v285_v10, %v65_v11 }
  0x8e   :  { %v69_v13 = vpack.c.bf16 %v66_v12, %v66_v12 }
  0x90   :  { %v70_v14 = vunpack.c.l.bf16 %v69_v13 }
  0x92   :  { %288 = vtanh.f32 %v70_v14 }
  0x93   :  { %v67_v15 = vpop.f32.mrf.mxu0 }
  0x98   :  { %v289_v16 = vpop.eup %288 }
  0x99   :  { %v72_v17 = vpack.c.bf16 %v289_v16, %v289_v16 }
  0x9b   :  { %255 = vmatmul.msk.bf16.vlgmr.msra.gmra.mxu1 %vm109_vm2, %v72_v17 }
 0x118   :  { %v122_v23 = vpop.f32.mrf.mxu1 }
 0x119   :  { %v123_v24 = vadd.f32 %v286_v22, %v122_v23 }
 0x11b   :  { %v126_v25 = vpack.c.bf16 %v123_v24, %v123_v24 }
 0x11d   :  { %v127_v26 = vunpack.c.l.bf16 %v126_v25 }
 0x11f   :  { %290 = vtanh.f32 %v127_v26 }
 0x120   :  { %v124_v27 = vpop.f32.mrf.mxu1 }
 0x125   :  { %v291_v28 = vpop.eup %290 }
 0x126   :  { %v129_v29 = vpack.c.bf16 %v291_v28, %v291_v28 }
 0x128   :  { %272 = vmatmul.msk.bf16.vlgmr.msra.gmra.mxu2 %vm109_vm2, %v129_v29 }
 0x1ab   :  { %v178_v31 = vpop.f32.mrf.mxu2 }
 0x1ac   :  { %v179_v32 = vadd.f32 %v287_v30, %v178_v31 }
 0x1ae   :  { %v184_v33 = vmin.f32 %v179_v32, 20.0  ;;  %182 = vst.msk [vmem:[#allocation2] sm:$0xff] %vm48_vm1, %v179_v32  ;;  %vm183_vm4 = vcmp.gt.f32.partialorder %v179_v32, 20.0 }
 0x1af   :  { %212 = dma.vmem_to_hbm [thread:$0]  %s208_s5, 128, %s210_s9, [#allocation3]  }
 0x1b0   :  { %v185_v34 = vmul.f32 1.442695, %v184_v33 }
 0x1b2   :  { %292 = vpow2.f32 %v185_v34 }
 0x1b3   :  { %v180_v35 = vpop.f32.mrf.mxu2 }
 0x1b8   :  { %v293_v36 = vpop.eup %292 }
 0x1b9   :  { %v187_v37 = vadd.f32 1.0, %v293_v36  ;;  %v190_v38 = vmul.f32 -0.5, %v293_v36  ;;  %v193_v40 = vand.u32 2147483647, %v293_v36 }
 0x1bb   :  { %294 = vlog2.f32 %v187_v37  ;;  %v191_v39 = vadd.f32 1.0, %v190_v38  ;;  %vm194_vm3 = vcmp.lt.f32.partialorder %v193_v40, 0.0004427343 }
 0x1bd   :  { %v192_v43 = vmul.f32 %v293_v36, %v191_v39 }
 0x1c1   :  { %v295_v41 = vpop.eup %294 }
 0x1c2   :  { %v189_v42 = vmul.f32 0.6931472, %v295_v41 }
 0x1c4   :  { %v195_v44 = vsel %vm194_vm3, %v192_v43, %v189_v42 }
 0x1c5   :  { %v196_v45 = vsel %vm183_vm4, %v179_v32, %v195_v44 }
 0x1c6   :  { %198 = vrot.lane.b32.xlu0 %v196_v45, %s349_s6 }
 0x238   :  { %v199_v46 = vpop.permute.xlu0 %198 }
 0x239   :  { %201 = vst.msk [vmem:[#allocation4] sm:$0xff] %vm48_vm1, %v199_v46 }
 0x23a   :  { %223 = dma.vmem_to_hbm [thread:$0]  %s219_s11, 128, %s221_s13, [#allocation5]  }
 0x23b   :  { %344 = dma.done.wait [#allocation3], 128  }
 0x23c   :  { %345 = vsyncadd [#allocation3], 4294967168 }
 0x23d   :  { %346 = dma.done.wait [#allocation5], 128  }
 0x23e   :  { %347 = vsyncadd [#allocation5], 4294967168 }
 0x23f   :  { %232 = vsyncpa [#allocation3], 1 }
 0x240   :  { %233 = vsyncpa [#allocation5], 1 }

</bundles_post_ra>
